<compile_context>
chip_gen: v6e
topology: v6e:2x2x1
jax: 0.10.0
libtpu: 0.0.40
codegen_flags: <defaults>
</compile_context>

<pallas_src>
import math
from typing import NamedTuple

import jax
import jax.numpy as jnp
from jax.experimental import pallas as pl
from jax.experimental.pallas import tpu as pltpu


def _round_up(a, b):
    return (a + b - 1) // b * b


def _cdiv(a, b):
    return (a + b - 1) // b


def _vmem_capacity_bytes():
    """Per-core VMEM capacity; conservative 64 MiB fallback (v7x per-TC)."""
    try:
        info = pltpu.get_tpu_info()
        cap = int(getattr(info, "vmem_capacity_bytes", 0) or 0)
        if cap > 0:
            return cap
    except Exception:
        pass
    return 64 * 1024 * 1024


# --------------------------------------------------------------------------
# Kernel body
# --------------------------------------------------------------------------
def _ffn_kernel(x_ref, w1_ref, b1_ref, w2_ref, b2_ref, o_ref, acc_ref):
    # x_ref : (tm, d_model_p)      w1_ref: (d_model_p, tk_ff)   b1_ref: (1, tk_ff)
    # w2_ref: (tk_ff, d_out_p)     b2_ref: (1, d_out_p)
    # o_ref : (tm, d_out_p)        acc_ref: (tm, d_out_p) f32 scratch
    k = pl.program_id(1)

    # Partial hidden block for this d_ff tile: relu(x @ W1[:, k] + b1[k]).
    # ReLU is elementwise over d_ff, so applying it per k-tile is exact.
    h = jnp.dot(x_ref[...], w1_ref[...], preferred_element_type=jnp.float32)
    h = jnp.maximum(h + b1_ref[...], 0.0)              # bias + ReLU in f32

    # TODO(synk): dropout is identity in eval mode; training-mode stochastic
    # dropout would use pltpu.prng_seed / pltpu.stateful_bernoulli here.

    partial_out = jnp.dot(h.astype(w2_ref.dtype), w2_ref[...],
                          preferred_element_type=jnp.float32)

    @pl.when(k == 0)
    def _():
        acc_ref[...] = partial_out          # write-through: no zero-fill + RMW

    @pl.when(k > 0)
    def _():
        acc_ref[...] += partial_out

    @pl.when(k == pl.num_programs(1) - 1)
    def _():
        o_ref[...] = (acc_ref[...] + b2_ref[...]).astype(o_ref.dtype)


# --------------------------------------------------------------------------
# Parameter preparation (one-time padding + tile-size selection)
# --------------------------------------------------------------------------
class FFNParams(NamedTuple):
    w1: jax.Array          # (d_model_p, d_ff_p)
    b1: jax.Array          # (1, d_ff_p)
    w2: jax.Array          # (d_ff_p, d_out_p)
    b2: jax.Array          # (1, d_out_p)
    d_model: int
    d_ff: int
    d_out: int
    tk_ff: int
    tm_cap: int
    vmem_limit_bytes: int
    prefer_two_row_tiles: bool


def prepare_ffn_params(w1, b1, w2, b2, *, tk_ff=None, tm_cap=None):
    """Pad weights once and pick generation-aware tile sizes."""
    d_model, d_ff = w1.shape
    d_out = w2.shape[1]
    w_itm = jnp.dtype(w1.dtype).itemsize
    x_itm = max(4, w_itm)        # conservative (activations may be f32)

    d_model_p = _round_up(d_model, 128)
    d_out_p = _round_up(d_out, 128)
    d_ff_p0 = _round_up(d_ff, 128)

    cap = _vmem_capacity_bytes()
    budget = int(cap * 0.70)
    vmem_limit = int(cap * 0.85)
    big_vmem = cap >= 96 * 1024 * 1024     # v5e/v6e have 128 MiB, v7x 64 MiB/TC

    auto_tm = tm_cap is None
    auto_tk = tk_ff is None
    if auto_tm:
        tm_cap = 512 if big_vmem else 256
    if auto_tk:
        tk_ff = min(d_ff_p0, 512)

    def vmem_bytes(tm_, tk_):
        dbl = 2  # Pallas double-buffers every auto-pipelined operand.
        return (dbl * (tm_ * d_model_p * x_itm       # x tile
                       + d_model_p * tk_ * w_itm     # W1 k-tile
                       + tk_ * w_itm                 # b1 k-tile
                       + tk_ * d_out_p * w_itm       # W2 k-tile
                       + d_out_p * w_itm             # b2
                       + tm_ * d_out_p * x_itm)      # out tile
                + tm_ * d_out_p * 4                  # f32 accumulator scratch
                + tm_ * tk_ * 4                      # f32 hidden intermediate
                + tm_ * tk_ * w_itm)                 # hidden cast for 2nd matmul

    # Shrink order (v7x guidance): tm first, keep tk_ff >= 256 if possible.
    if auto_tm:
        while vmem_bytes(tm_cap, tk_ff) > budget and tm_cap > 128:
            tm_cap -= 128
    if auto_tk:
        while vmem_bytes(tm_cap, tk_ff) > budget and tk_ff > 256:
            tk_ff -= 128
        while vmem_bytes(tm_cap, tk_ff) > budget and tk_ff > 128:
            tk_ff -= 128
    assert vmem_bytes(tm_cap, tk_ff) <= vmem_limit, (
        "d_model/d_out too large for the untiled feature dims on this chip; "
        "a d_model/d_out tiling fallback is required.")

    d_ff_p = _round_up(d_ff_p0, tk_ff)

    def pad2(a, rows, cols):
        pr, pc = rows - a.shape[0], cols - a.shape[1]
        return a if (pr == 0 and pc == 0) else jnp.pad(a, ((0, pr), (0, pc)))

    w1p = pad2(w1, d_model_p, d_ff_p)
    b1p = pad2(b1.reshape(1, -1), 1, d_ff_p)
    w2p = pad2(w2, d_ff_p, d_out_p)
    b2p = pad2(b2.reshape(1, -1), 1, d_out_p)

    return FFNParams(w1p, b1p, w2p, b2p, d_model, d_ff, d_out,
                     tk_ff, tm_cap, vmem_limit, not big_vmem)


# --------------------------------------------------------------------------
# Forward wrapper
# --------------------------------------------------------------------------
def positionwise_ffn(x, params: FFNParams):
    """y = relu(x @ w1 + b1) @ w2 + b2 over the last dim of x (eval-mode FFN)."""
    B, S, d_model = x.shape
    assert d_model == params.d_model, "x last dim must match d_model"
    M = B * S

    d_model_p, d_ff_p = params.w1.shape
    d_out_p = params.w2.shape[1]
    x_itm = jnp.dtype(x.dtype).itemsize
    w_itm = jnp.dtype(params.w1.dtype).itemsize

    # Sub-32-bit activations pack rows along sublanes: round the row tile to
    # the dtype's native sublane multiple (8 f32, 16 bf16, 32 int8/fp8).
    mult = max(8, 32 // x_itm)

    # Balanced row tile: minimize padded rows while keeping tiles large
    # (weight tiles are re-streamed from HBM once per row tile).
    n_row_tiles = _cdiv(M, params.tm_cap)
    if params.prefer_two_row_tiles and n_row_tiles == 1 and M > mult:
        n_row_tiles = 2        # keep both TensorCores busy on 2-TC chips (v7x)
    tm = min(params.tm_cap, _round_up(_cdiv(M, n_row_tiles), mult))

    Mp = _round_up(M, tm)
    tk_ff = params.tk_ff

    x2d = x.reshape(M, d_model)
    if Mp != M or d_model_p != d_model:
        x2d = jnp.pad(x2d, ((0, Mp - M), (0, d_model_p - d_model)))

    grid = (Mp // tm, d_ff_p // tk_ff)   # rows parallel, d_ff reduction last

    weight_bytes = (params.w1.size + params.b1.size
                    + params.w2.size + params.b2.size) * w_itm
    cost = pl.CostEstimate(
        flops=2 * Mp * (d_model_p * d_ff_p + d_ff_p * d_out_p),
        transcendentals=0,
        bytes_accessed=(Mp * d_model_p * x_itm
                        + weight_bytes * (Mp // tm)   # weights re-stream / row tile
                        + Mp * d_out_p * x_itm),
    )

    # TODO(synk): on v5e, sweeping pipeline_mode=pl.Buffered(3) on the W1/W2
    # specs may help if a profile shows exposed weight DMA at k boundaries.
    out = pl.pallas_call(
        _ffn_kernel,
        out_shape=jax.ShapeDtypeStruct((Mp, d_out_p), x.dtype),
        grid_spec=pltpu.PrefetchScalarGridSpec(
            num_scalar_prefetch=0,
            grid=grid,
            in_specs=[
                pl.BlockSpec((tm, d_model_p), lambda i, k: (i, 0)),     # x row tile
                pl.BlockSpec((d_model_p, tk_ff), lambda i, k: (0, k)),  # W1 k-tile
                pl.BlockSpec((1, tk_ff), lambda i, k: (0, k)),          # b1 k-tile
                pl.BlockSpec((tk_ff, d_out_p), lambda i, k: (k, 0)),    # W2 k-tile
                pl.BlockSpec((1, d_out_p), lambda i, k: (0, 0)),        # b2
            ],
            out_specs=pl.BlockSpec((tm, d_out_p), lambda i, k: (i, 0)),
            scratch_shapes=[pltpu.VMEM((tm, d_out_p), jnp.float32)],
        ),
        compiler_params=pltpu.CompilerParams(
            dimension_semantics=("parallel", "arbitrary"),
            vmem_limit_bytes=params.vmem_limit_bytes,
        ),
        cost_estimate=cost,
    )(x2d, params.w1, params.b1, params.w2, params.b2)

    return out[:M, :params.d_out].reshape(B, S, params.d_out)


# --------------------------------------------------------------------------
# Init & reference
# --------------------------------------------------------------------------
def init_ffn_weights(key, d_model, d_ff, d_out, dtype=jnp.float32):
    """Init mimicking PyTorch nn.Linear (uniform +-1/sqrt(fan_in)).
    Weights stored transposed vs PyTorch: (in_features, out_features)."""
    k1, k2, k3, k4 = jax.random.split(key, 4)
    bound1 = 1.0 / math.sqrt(d_model)
    bound2 = 1.0 / math.sqrt(d_ff)
    w1 = jax.random.uniform(k1, (d_model, d_ff), dtype, -bound1, bound1)
    b1 = jax.random.uniform(k2, (d_ff,), dtype, -bound1, bound1)
    w2 = jax.random.uniform(k3, (d_ff, d_out), dtype, -bound2, bound2)
    b2 = jax.random.uniform(k4, (d_out,), dtype, -bound2, bound2)
    return w1, b1, w2, b2


def _reference(x, w1, b1, w2, b2):
    x32 = x.astype(jnp.float32)
    h = jnp.maximum(x32 @ w1.astype(jnp.float32) + b1.astype(jnp.float32), 0.0)
    return h @ w2.astype(jnp.float32) + b2.astype(jnp.float32)


if __name__ == "__main__":
    key = jax.random.PRNGKey(0)

    # 1) Small shapes consistent with the module (batch, seq, d_model), f32.
    B, S = 2, 8
    d_model, d_ff, d_out = 32, 64, 32
    kx, kp, key = jax.random.split(key, 3)
    x = jax.random.normal(kx, (B, S, d_model), jnp.float32)
    w1, b1, w2, b2 = init_ffn_weights(kp, d_model, d_ff, d_out)
    params = prepare_ffn_params(w1, b1, w2, b2)

    y = jax.block_until_ready(positionwise_ffn(x, params))
    ref = _reference(x, w1, b1, w2, b2)
    assert y.shape == (B, S, d_out)
    assert jnp.allclose(y, ref, atol=1e-5, rtol=1e-5), "mismatch vs reference (1)"

    # 2) Exercise the multi-tile path (2 row tiles x 3 d_ff reduction tiles)
    #    via explicit tile-size overrides.
    B2, S2 = 2, 16
    dm2, dff2, dout2 = 48, 320, 72
    kx2, kp2 = jax.random.split(key)
    x2 = jax.random.normal(kx2, (B2, S2, dm2), jnp.float32)
    w1b, b1b, w2b, b2b = init_ffn_weights(kp2, dm2, dff2, dout2)
    params2 = prepare_ffn_params(w1b, b1b, w2b, b2b, tk_ff=128, tm_cap=16)
    y2 = jax.block_until_ready(positionwise_ffn(x2, params2))
    ref2 = _reference(x2, w1b, b1b, w2b, b2b)
    assert y2.shape == (B2, S2, dout2)
    assert jnp.allclose(y2, ref2, atol=1e-4, rtol=1e-4), "mismatch vs reference (2)"

    # 3) bf16 activations/weights (f32 accumulation inside the kernel).
    xb = x.astype(jnp.bfloat16)
    w1h, b1h, w2h, b2h = (w1.astype(jnp.bfloat16), b1.astype(jnp.bfloat16),
                          w2.astype(jnp.bfloat16), b2.astype(jnp.bfloat16))
    params3 = prepare_ffn_params(w1h, b1h, w2h, b2h)
    y3 = jax.block_until_ready(positionwise_ffn(xb, params3))
    ref3 = _reference(xb, w1h, b1h, w2h, b2h)
    assert y3.shape == (B, S, d_out)
    assert jnp.allclose(y3.astype(jnp.float32), ref3, atol=5e-2, rtol=5e-2), \
        "mismatch vs reference (3, bf16)"

    print("KERNEL_OK")
</pallas_src>

<mosaic_0001>
module attributes {stable_mosaic.version = 11 : i64} {
  func.func @_ffn_kernel(%arg0: i32, %arg1: i32, %arg2: memref<8x128xf32, #tpu.memory_space<vmem>>, %arg3: memref<128x128xf32, #tpu.memory_space<vmem>>, %arg4: memref<1x128xf32, #tpu.memory_space<vmem>>, %arg5: memref<128x128xf32, #tpu.memory_space<vmem>>, %arg6: memref<1x128xf32, #tpu.memory_space<vmem>>, %arg7: memref<8x128xf32, #tpu.memory_space<vmem>>, %arg8: memref<8x128xf32, #tpu.memory_space<vmem>>) attributes {dimension_semantics = [#tpu.dimension_semantics<parallel>, #tpu.dimension_semantics<arbitrary>], iteration_bounds = array<i64: 2, 1>, scalar_prefetch = 0 : i64, scratch_operands = 1 : i64, tpu.core_type = #tpu.core_type<tc>, window_params = [{transform_indices = @transform_0, window_bounds = array<i64: 8, 128>}, {transform_indices = @transform_1, window_bounds = array<i64: 128, 128>}, {transform_indices = @transform_2, window_bounds = array<i64: 1, 128>}, {transform_indices = @transform_3, window_bounds = array<i64: 128, 128>}, {pipeline_mode = #tpu.pipeline_mode<synchronous>, transform_indices = @transform_4, window_bounds = array<i64: 1, 128>}, {transform_indices = @transform_5, window_bounds = array<i64: 8, 128>}]} {
    %c0 = arith.constant 0 : index
    %c0_0 = arith.constant 0 : index
    %0 = vector.load %arg2[%c0, %c0_0] : memref<8x128xf32, #tpu.memory_space<vmem>>, vector<8x128xf32>
    %c0_1 = arith.constant 0 : index
    %c0_2 = arith.constant 0 : index
    %1 = vector.load %arg3[%c0_1, %c0_2] : memref<128x128xf32, #tpu.memory_space<vmem>>, vector<128x128xf32>
    %cst = arith.constant dense<0.000000e+00> : vector<8x128xf32>
    %2 = tpu.matmul %0, %1, %cst {dimension_numbers = #tpu.dot_dimension_numbers<[1], [0], [0], [1], [0, 0, 1, 1], [], []>} : vector<8x128xf32>, vector<128x128xf32>, vector<8x128xf32> -> vector<8x128xf32>
    %c0_3 = arith.constant 0 : index
    %c0_4 = arith.constant 0 : index
    %3 = vector.load %arg4[%c0_3, %c0_4] : memref<1x128xf32, #tpu.memory_space<vmem>>, vector<1x128xf32>
    %4 = vector.broadcast %3 : vector<1x128xf32> to vector<8x128xf32>
    %5 = arith.addf %2, %4 : vector<8x128xf32>
    %cst_5 = arith.constant 0.000000e+00 : f32
    %6 = vector.broadcast %cst_5 : f32 to vector<8x128xf32>
    %7 = arith.maximumf %5, %6 : vector<8x128xf32>
    %c0_6 = arith.constant 0 : index
    %c0_7 = arith.constant 0 : index
    %8 = vector.load %arg5[%c0_6, %c0_7] : memref<128x128xf32, #tpu.memory_space<vmem>>, vector<128x128xf32>
    %cst_8 = arith.constant dense<0.000000e+00> : vector<8x128xf32>
    %9 = tpu.matmul %7, %8, %cst_8 {dimension_numbers = #tpu.dot_dimension_numbers<[1], [0], [0], [1], [0, 0, 1, 1], [], []>} : vector<8x128xf32>, vector<128x128xf32>, vector<8x128xf32> -> vector<8x128xf32>
    %c0_i32 = arith.constant 0 : i32
    %10 = arith.cmpi eq, %arg1, %c0_i32 : i32
    %11 = arith.extui %10 : i1 to i32
    %c0_i32_9 = arith.constant 0 : i32
    %12 = arith.cmpi ne, %11, %c0_i32_9 : i32
    scf.if %12 {
      %c0_14 = arith.constant 0 : index
      %c0_15 = arith.constant 0 : index
      %19 = vector.load %arg8[%c0_14, %c0_15] : memref<8x128xf32, #tpu.memory_space<vmem>>, vector<8x128xf32>
      tpu.vector_store %arg8[%c0_14, %c0_15], %9 {strides = array<i32>} : memref<8x128xf32, #tpu.memory_space<vmem>>, vector<8x128xf32>,
    } else {
    }
    %c0_i32_10 = arith.constant 0 : i32
    %13 = arith.cmpi sgt, %arg1, %c0_i32_10 : i32
    %14 = arith.extui %13 : i1 to i32
    %c0_i32_11 = arith.constant 0 : i32
    %15 = arith.cmpi ne, %14, %c0_i32_11 : i32
    scf.if %15 {
      %c0_14 = arith.constant 0 : index
      %c0_15 = arith.constant 0 : index
      %19 = vector.load %arg8[%c0_14, %c0_15] : memref<8x128xf32, #tpu.memory_space<vmem>>, vector<8x128xf32>
      %20 = arith.addf %19, %9 : vector<8x128xf32>
      %c0_16 = arith.constant 0 : index
      %c0_17 = arith.constant 0 : index
      %21 = vector.load %arg8[%c0_16, %c0_17] : memref<8x128xf32, #tpu.memory_space<vmem>>, vector<8x128xf32>
      tpu.vector_store %arg8[%c0_16, %c0_17], %20 {strides = array<i32>} : memref<8x128xf32, #tpu.memory_space<vmem>>, vector<8x128xf32>,
    } else {
    }
    %c0_i32_12 = arith.constant 0 : i32
    %16 = arith.cmpi eq, %arg1, %c0_i32_12 : i32
    %17 = arith.extui %16 : i1 to i32
    %c0_i32_13 = arith.constant 0 : i32
    %18 = arith.cmpi ne, %17, %c0_i32_13 : i32
    scf.if %18 {
      %c0_14 = arith.constant 0 : index
      %c0_15 = arith.constant 0 : index
      %19 = vector.load %arg8[%c0_14, %c0_15] : memref<8x128xf32, #tpu.memory_space<vmem>>, vector<8x128xf32>
      %c0_16 = arith.constant 0 : index
      %c0_17 = arith.constant 0 : index
      %20 = vector.load %arg6[%c0_16, %c0_17] : memref<1x128xf32, #tpu.memory_space<vmem>>, vector<1x128xf32>
      %21 = vector.broadcast %20 : vector<1x128xf32> to vector<8x128xf32>
      %22 = arith.addf %19, %21 : vector<8x128xf32>
      %c0_18 = arith.constant 0 : index
      %c0_19 = arith.constant 0 : index
      %23 = vector.load %arg7[%c0_18, %c0_19] : memref<8x128xf32, #tpu.memory_space<vmem>>, vector<8x128xf32>
      tpu.vector_store %arg7[%c0_18, %c0_19], %22 {strides = array<i32>} : memref<8x128xf32, #tpu.memory_space<vmem>>, vector<8x128xf32>,
    } else {
    }
    return
  }
  func.func @transform_0(%arg0: i32, %arg1: i32) -> (i32, i32) {
    %c0_i32 = arith.constant 0 : i32
    %c0_i32_0 = arith.constant 0 : i32
    return %arg0, %c0_i32 : i32, i32
  }
  func.func @transform_1(%arg0: i32, %arg1: i32) -> (i32, i32) {
    %c0_i32 = arith.constant 0 : i32
    %c0_i32_0 = arith.constant 0 : i32
    return %c0_i32, %arg1 : i32, i32
  }
  func.func @transform_2(%arg0: i32, %arg1: i32) -> (i32, i32) {
    %c0_i32 = arith.constant 0 : i32
    %c0_i32_0 = arith.constant 0 : i32
    return %c0_i32, %arg1 : i32, i32
  }
  func.func @transform_3(%arg0: i32, %arg1: i32) -> (i32, i32) {
    %c0_i32 = arith.constant 0 : i32
    %c0_i32_0 = arith.constant 0 : i32
    return %arg1, %c0_i32 : i32, i32
  }
  func.func @transform_4(%arg0: i32, %arg1: i32) -> (i32, i32) {
    %c0_i32 = arith.constant 0 : i32
    %c0_i32_0 = arith.constant 0 : i32
    %c0_i32_1 = arith.constant 0 : i32
    return %c0_i32, %c0_i32_0 : i32, i32
  }
  func.func @transform_5(%arg0: i32, %arg1: i32) -> (i32, i32) {
    %c0_i32 = arith.constant 0 : i32
    %c0_i32_0 = arith.constant 0 : i32
    return %arg0, %c0_i32 : i32, i32
  }
}

</mosaic_0001>

<bundles_post_ra>
// kernel: tpu_custom_call.1
= control target key start
LH: loop header
LB: loop body
LE: loop exit
PB: predicated region body
PF: predicated region fallthrough
CT: control target
= control target key end

     0   :  { %s1286_s0 = inlined_call_operand.hbm [shape: f32[16,128], index: 0, kind: input, shape index: {}]   ;;  %s1287_s1 = inlined_call_operand.hbm [shape: f32[128,128], index: 1, kind: input, shape index: {}]   ;;  %s1288_s2 = inlined_call_operand.vmem [shape: f32[1,128], index: 2, kind: input, shape index: {}]   ;;  %s1289_s3 = inlined_call_operand.hbm [shape: f32[128,128], index: 3, kind: input, shape index: {}]   ;;  %s1290_s4 = inlined_call_operand.vmem [shape: f32[1,128], index: 4, kind: input, shape index: {}]   ;;  %s1291_s5 = inlined_call_operand.hbm [shape: f32[16,128], index: 5, kind: output, shape index: {}]  }
   0x1   :  { %1295 = sst [smem:[#allocation13_spill]] %s1287_s1 }
   0x2   :  { %10 = vsyncpa [#allocation4], 0 }
   0x3   :  { %12 = vsyncpa [#allocation4 + $0x1], 0 }
   0x4   :  { %13 = vsyncpa [#allocation7], 0 }
   0x5   :  { %14 = vsyncpa [#allocation5], 0 }
   0x6   :  { %16 = vsyncpa [#allocation5 + $0x1], 0  ;;  %s1059_s18 = smov 0   ;;  %s1061_s19 = smov 0  }
   0x7   :  { %s1063_s20 = smov 0   ;;  %s1065_s21 = smov 0  }
   0x8   :  { %s1067_s22 = smov 0   ;;  %s1069_s23 = smov 0  }
   0x9 LB: > { %s644_s24 = sadd.s32 4294967295, %s1019_s23   ;;  %s645_s25 = sadd.s32 4294967294, %s1019_s23   ;;  %s1019_s23 = sphi %s1069_s23, %s22_s23   ;;  %s1015_s22 = sphi %s1067_s22, %s1313_s22   ;;  %s1011_s21 = sphi %s1065_s21, %s1312_s21   ;;  %s1007_s20 = sphi %s1063_s20, %s1311_s20   ;;  %s1003_s19 = sphi %s1061_s19, %s1310_s19   ;;  %s999_s18 = sphi %s1059_s18, %s1309_s18  }
   0xa   : > { %p54_p0 = scmp.ne.s32.totalorder %s1003_s19, %s999_s18  ;;  %p1093_p1 = scmp.eq.s32.totalorder %s644_s24, 0 }
   0xb   : > { %p1097_p2 = scmp.eq.s32.totalorder %s644_s24, 1  ;;  %p183_p3 = scmp.eq.s32.totalorder %s645_s25, 1 }
   0xc   : > { %s1296_s26 = scalar_select %p1093_p1, 1, 0 }
   0xd   : > { %p1103_p4 = por %p1093_p1, %p54_p0  ;;  %p646_p5 = scmp.ge.s32.totalorder %s1019_s23, 1 }
   0xe   : > { %p1108_p6 = por %p183_p3, %p54_p0  ;;  %p190_p7 = scmp.lt.s32.totalorder %s1019_s23, 3 }
   0xf   : > { %s1298_s28 = scalar_select %p1103_p4, 1, 0 }
  0x10   : > { %s1299_s29 = scalar_select %p1108_p6, 1, 0 }
  0x11   : > { %p1113_p8 = pnand %p646_p5, %p190_p7  ;;  %s1021_s6 = smov [#allocation6]  }
  0x12   : > { %s204_s7 = sshll.u32 %s1021_s6, 4  ;;  %s1022_s9 = smov [#allocation8]   ;;  %s205_s7 = int_to_ptr.vmem [resolvable:$true] %s204_s7 }
  0x13   : > { %p780_p9 = pneg %p1113_p8  ;;  %s226_s10 = sshll.u32 %s1022_s9, 4  ;;  %s227_s10 = int_to_ptr.vmem [resolvable:$true] %s226_s10 }
  0x14   : > { %s866_s11 = scalar_lea.vmem %s205_s7, 2048  ;;  %p874_p5 = scmp.lt.s32.totalorder %s205_s7, %s205_s7 }
  0x15   : > { %p1122_p11 = pnand %p780_p9, %p1093_p1  ;;  %p867_p13 = scmp.ne.s32.totalorder %s205_s7, %s866_s11 }
  0x16   : > { %p875_p7 = scmp.lt.s32.totalorder %s866_s11, %s866_s11 }
  0x17   : > { %p857_p12 = pneg %p1122_p11 }
  0x18   : > { %p876_p10 = por %p875_p7, %p874_p5 }
  0x19   : > { %p869_p0 = pnand %p867_p13, %p857_p12 }
  0x1b   : > { %p870_p3 = pneg %p869_p0 }
  0x1d   : > { %p877_p9 = pnand %p876_p10, %p870_p3 }
  0x1f   : > { %880 = shalt.err (!%p877_p9)
}
  0x20   : > { %s1023_s12 = smov 128   ;;  %s1024_s13 = smov 8  }
  0x21   : > { %s1302_s1 = sld [smem:[#allocation13_spill]]  ;;  %s892_s16 = scalar_lea.vmem %s227_s10, 2048 }
  0x22   : > { %p893_p6 = scmp.ne.s32.totalorder %s227_s10, %s892_s16  ;;  %p900_p1 = scmp.lt.s32.totalorder %s227_s10, %s227_s10 }
  0x23   : > { %p901_p4 = scmp.lt.s32.totalorder %s892_s16, %s892_s16 }
  0x24   : > { %p895_p13 = pnand %p893_p6, %p857_p12 }
  0x25   : > { %p902_p5 = por %p901_p4, %p900_p1 }
  0x26   : > { %p896_p0 = pneg %p895_p13 }
  0x27   : > { %783 = dma.hbm_to_vmem [thread:$0]  (!%p1122_p11), %s1302_s1, 2048, %s205_s7, [#allocation7], %s1023_s12, %s1023_s12, %s1024_s13  }
  0x28   : > { %p903_p10 = pnand %p902_p5, %p896_p0 }
  0x2a   : > { %906 = shalt.err (!%p903_p10)
}
  0x2b   : > { %786 = dma.hbm_to_vmem [thread:$0]  (!%p1122_p11), %s1289_s3, 2048, %s227_s10, [#allocation7], %s1023_s12, %s1023_s12, %s1024_s13  }
  0x2c   : > { %s34_s25 = sadd.s32 1, %s1015_s22  ;;  %s41_s6 = sadd.s32 1, %s1007_s20 }
  0x2d   : > { %p36_p1 = scmp.ge.s32.totalorder %s34_s25, 2  ;;  %p48_p4 = scmp.ne.s32.totalorder %s1007_s20, %s1003_s19 }
  0x2e   : > { %p49_p6 = scmp.eq.s32.totalorder %s1019_s23, 0  ;;  %p797_p12 = scmp.lt.s32.totalorder %s1019_s23, 2 }
  0x2f   : > { %s1315_s25 = smov (%p36_p1, %s34_s25), 0  ;;  %p1154_p7 = por %p1097_p2, %p48_p4 }
  0x30   : > { %p50_p3 = por %p49_p6, %p48_p4  ;;  %s38_s8 = ssub.s32 %s1015_s22, %s1315_s25 }
  0x31   : > { %s243_s9 = sand.u32 1, %s1007_s20   ;;  %p39_p9 = scmp.eq.s32.totalorder %s38_s8, 0 }
  0x32   : > { %s651_s10 = sshll.u32 %s243_s9, 3  ;;  %s652_s11 = sshll.u32 %s1015_s22, 7 }
  0x33   : > { %s1163_s12 = scalar_select %p39_p9, %s1007_s20, %s41_s6  }
  0x34   : > { %s252_s15 = scalar_lea.hbm %s1286_s0, %s652_s11  ;;  %s247_s16 = scalar_lea.vmem [#allocation3], %s651_s10 }
  0x35   : > { %s254_s17 = sshll.u32 %s247_s16, 4  ;;  %p1170_p11 = pnand %p797_p12, %p50_p3  ;;  %s255_s17 = int_to_ptr.vmem [resolvable:$true] %s254_s17 }
  0x36   : > { %s244_s24 = scalar_lea.sflag [#allocation4], %s243_s9  ;;  %s920_s8 = scalar_lea.vmem %s255_s17, 128 }
  0x37   : > { %p909_p2 = pneg %p1170_p11  ;;  %p921_p13 = scmp.ne.s32.totalorder %s255_s17, %s920_s8 }
  0x38   : > { %s1025_s6 = smov [#allocation3]  }
  0x39   : > { %p923_p0 = pnand %p921_p13, %p909_p2  ;;  %s925_s1 = sshll.u32 %s1025_s6, 4  ;;  %s926_s1 = int_to_ptr.vmem [resolvable:$false] %s925_s1 }
  0x3a   : > { %s927_s11 = scalar_lea.vmem %s926_s1, 256  ;;  %p928_p10 = scmp.lt.s32.totalorder %s255_s17, %s926_s1 }
  0x3b   : > { %p924_p5 = pneg %p923_p0  ;;  %p929_p1 = scmp.lt.s32.totalorder %s927_s11, %s920_s8 }
  0x3d   : > { %p930_p4 = por %p929_p1, %p928_p10 }
  0x3f   : > { %p931_p6 = pnand %p930_p4, %p924_p5 }
  0x41   : > { %934 = shalt.err (!%p931_p6)
}
  0x42   : > { %790 = dma.hbm_to_vmem [thread:$0]  (!%p1170_p11), %s252_s15, 128, %s255_s17, %s244_s24  }
  0x43   : > { %263 = sbr.rel (%p1113_p8) target bundleno = 515 (0x203), region = 40  ;;  %s1181_s9 = sand.u32 (!%p1113_p8), 1, %s1003_s19  }
  0x44   : > { %s654_s10 = sshll.u32 (!%p1113_p8), %s1181_s9, 3  ;;  %s266_s13 = scalar_lea.sflag (!%p1113_p8), [#allocation4], %s1181_s9 }
  0x45   : > { %s1187_s1 = scalar_lea.vmem (!%p1113_p8), [#allocation3], %s654_s10  ;;  %p1305_p12 = scmp.ne.s32.totalorder (!%p1113_p8), %s1298_s28, 0 }
  0x48   : > { %986 = dma.done.wait (%p1305_p12), %s266_s13, 128  }
  0x49   : > { %988 = vsyncadd (%p1305_p12), %s266_s13, 4294967168  ;;  %p1306_p3 = scmp.ne.s32.totalorder %s1296_s26, 0 }
  0x4b   : > { %990 = dma.done.wait (%p1306_p3), [#allocation7], 4096  }
  0x4c   : > { %992 = vsyncadd (%p1306_p3), [#allocation7], 4294963200  ;;  %v1026_v0 = vmov 0.0   ;;  %vm1027_vm0 = vmmov 0   ;;  %v327_v1 = vld [vmem:[#allocation6 + $0x78] sm:$0xff]  ;;  %v326_v2 = vld [vmem:[#allocation6 + $0x70] sm:$0xff] }
  0x4d   : > { %698 = vmatprep.subr.mxu0 %v1026_v0  ;;  %730 = vmatprep.mubr.msk.f32.mxu0 %vm1027_vm0, %v1026_v0  ;;  %v325_v3 = vld [vmem:[#allocation6 + $0x68] sm:$0xff]  ;;  %v324_v4 = vld [vmem:[#allocation6 + $0x60] sm:$0xff]  ;;  %v421_v5 = vld [vmem:[#allocation8 + $0x78] sm:$0xff]  ;;  %s661_s15 = sshll.u32 %s1011_s21, 7  ;;  %s306_s16 = scalar_lea.vmem [#allocation9], %s654_s10 }
  0x4e   : > { %733 = vmatprep.subr.mxu1 %v1026_v0  ;;  %765 = vmatprep.mubr.msk.f32.mxu1 %vm1027_vm0, %v1026_v0  ;;  %v323_v6 = vld [vmem:[#allocation6 + $0x58] sm:$0xff]  ;;  %v420_v7 = vld [vmem:[#allocation8 + $0x70] sm:$0xff]  ;;  %v419_v8 = vld [vmem:[#allocation8 + $0x68] sm:$0xff]  ;;  %s531_s17 = sshll.u32 %s306_s16, 4  ;;  %s1244_s8 = scalar_lea.hbm %s1291_s5, %s661_s15  ;;  %s532_s17 = int_to_ptr.vmem [resolvable:$true] %s531_s17 }
  0x4f   : > { %699 = vmatpush3.msra.mxu0 %v327_v1  ;;  %734 = vmatpush3.msra.mxu1 %v421_v5  ;;  %v322_v9 = vld [vmem:[#allocation6 + $0x50] sm:$0xff]  ;;  %v418_v10 = vld [vmem:[#allocation8 + $0x60] sm:$0xff]  ;;  %v321_v11 = vld [vmem:[#allocation6 + $0x48] sm:$0xff]  ;;  %s518_s6 = scalar_lea.sflag [#allocation5], %s1181_s9  ;;  %s935_s11 = scalar_lea.vmem %s532_s17, 128 }
  0x50   : > { %700 = vmatprep.subr.mxu0 %v1026_v0  ;;  %735 = vmatprep.subr.mxu1 %v1026_v0  ;;  %v417_v12 = vld [vmem:[#allocation8 + $0x58] sm:$0xff]  ;;  %v320_v13 = vld [vmem:[#allocation6 + $0x40] sm:$0xff]  ;;  %v416_v14 = vld [vmem:[#allocation8 + $0x50] sm:$0xff]  ;;  %p936_p8 = scmp.ne.s32.totalorder %s532_s17, %s935_s11  ;;  %s1028_s21 = smov [#allocation9]  }
  0x51   : > { %701 = vmatpush3.msra.mxu0 %v326_v2  ;;  %736 = vmatpush3.msra.mxu1 %v420_v7  ;;  %v319_v15 = vld [vmem:[#allocation6 + $0x38] sm:$0xff]  ;;  %v415_v16 = vld [vmem:[#allocation8 + $0x48] sm:$0xff]  ;;  %v318_v17 = vld [vmem:[#allocation6 + $0x30] sm:$0xff]  ;;  %s939_s13 = sshll.u32 %s1028_s21, 4  ;;  %s940_s13 = int_to_ptr.vmem [resolvable:$false] %s939_s13 }
  0x52   : > { %702 = vmatprep.subr.mxu0 %v1026_v0  ;;  %737 = vmatprep.subr.mxu1 %v1026_v0  ;;  %v414_v18 = vld [vmem:[#allocation8 + $0x40] sm:$0xff]  ;;  %v317_v19 = vld [vmem:[#allocation6 + $0x28] sm:$0xff]  ;;  %v413_v20 = vld [vmem:[#allocation8 + $0x38] sm:$0xff]  ;;  %p937_p9 = pnand %p936_p8, %p1154_p7  ;;  %s941_s10 = scalar_lea.vmem %s940_s13, 256 }
  0x53   : > { %703 = vmatpush3.msra.mxu0 %v325_v3  ;;  %738 = vmatpush3.msra.mxu1 %v419_v8  ;;  %v316_v21 = vld [vmem:[#allocation6 + $0x20] sm:$0xff]  ;;  %v412_v22 = vld [vmem:[#allocation8 + $0x30] sm:$0xff]  ;;  %v315_v23 = vld [vmem:[#allocation6 + $0x18] sm:$0xff]  ;;  %p942_p2 = scmp.lt.s32.totalorder %s532_s17, %s940_s13  ;;  %p943_p13 = scmp.lt.s32.totalorder %s941_s10, %s935_s11 }
  0x54   : > { %704 = vmatprep.subr.mxu0 %v1026_v0  ;;  %739 = vmatprep.subr.mxu1 %v1026_v0  ;;  %v411_v24 = vld [vmem:[#allocation8 + $0x28] sm:$0xff]  ;;  %v314_v25 = vld [vmem:[#allocation6 + $0x10] sm:$0xff]  ;;  %v410_v26 = vld [vmem:[#allocation8 + $0x20] sm:$0xff]  ;;  %p938_p11 = pneg %p937_p9 }
  0x55   : > { %705 = vmatpush3.msra.mxu0 %v324_v4  ;;  %740 = vmatpush3.msra.mxu1 %v418_v10  ;;  %v313_v27 = vld [vmem:[#allocation6 + $0x8] sm:$0xff]  ;;  %v409_v28 = vld [vmem:[#allocation8 + $0x18] sm:$0xff]  ;;  %v312_v29 = vld [vmem:[#allocation6] sm:$0xff]  ;;  %p944_p0 = por %p943_p13, %p942_p2 }
  0x56   : > { %706 = vmatprep.subr.mxu0 %v1026_v0  ;;  %741 = vmatprep.subr.mxu1 %v1026_v0  ;;  %v311_v30 = vld [vmem:[%s1187_s1] sm:$0xff]  ;;  %v407_v32 = vld [vmem:[#allocation8 + $0x8] sm:$0xff]  ;;  %v406_v33 = vld [vmem:[#allocation8] sm:$0xff] }
  0x57   : > { %707 = vmatpush3.msra.mxu0 %v323_v6  ;;  %742 = vmatpush3.msra.mxu1 %v417_v12  ;;  %v408_v31 = vld [vmem:[#allocation8 + $0x10] sm:$0xff]  ;;  %p945_p5 = pnand %p944_p0, %p938_p11 }
  0x58   : > { %708 = vmatprep.subr.mxu0 %v1026_v0  ;;  %743 = vmatprep.subr.mxu1 %v1026_v0  ;;  %v658_v34 = vld [vmem:[%s1288_s2] ss:$0 sm:$0xff] }
  0x59   : > { %709 = vmatpush3.msra.mxu0 %v322_v9  ;;  %744 = vmatpush3.msra.mxu1 %v416_v14  ;;  %v659_v39 = vld [vmem:[%s1290_s4] ss:$0 sm:$0xff] }
  0x5a   : > { %710 = vmatprep.subr.mxu0 %v1026_v0  ;;  %745 = vmatprep.subr.mxu1 %v1026_v0 }
  0x5b   : > { %711 = vmatpush3.msra.mxu0 %v321_v11  ;;  %746 = vmatpush3.msra.mxu1 %v415_v16 }
  0x5c   : > { %712 = vmatprep.subr.mxu0 %v1026_v0  ;;  %747 = vmatprep.subr.mxu1 %v1026_v0 }
  0x5d   : > { %713 = vmatpush3.msra.mxu0 %v320_v13  ;;  %748 = vmatpush3.msra.mxu1 %v414_v18 }
  0x5e   : > { %714 = vmatprep.subr.mxu0 %v1026_v0  ;;  %749 = vmatprep.subr.mxu1 %v1026_v0 }
  0x5f   : > { %715 = vmatpush3.msra.mxu0 %v319_v15  ;;  %750 = vmatpush3.msra.mxu1 %v413_v20 }
  0x60   : > { %716 = vmatprep.subr.mxu0 %v1026_v0  ;;  %751 = vmatprep.subr.mxu1 %v1026_v0 }
  0x61   : > { %717 = vmatpush3.msra.mxu0 %v318_v17  ;;  %752 = vmatpush3.msra.mxu1 %v412_v22 }
  0x62   : > { %718 = vmatprep.subr.mxu0 %v1026_v0  ;;  %753 = vmatprep.subr.mxu1 %v1026_v0 }
  0x63   : > { %719 = vmatpush3.msra.mxu0 %v317_v19  ;;  %754 = vmatpush3.msra.mxu1 %v411_v24 }
  0x64   : > { %720 = vmatprep.subr.mxu0 %v1026_v0  ;;  %755 = vmatprep.subr.mxu1 %v1026_v0 }
  0x65   : > { %721 = vmatpush3.msra.mxu0 %v316_v21  ;;  %756 = vmatpush3.msra.mxu1 %v410_v26 }
  0x66   : > { %722 = vmatprep.subr.mxu0 %v1026_v0  ;;  %757 = vmatprep.subr.mxu1 %v1026_v0 }
  0x67   : > { %723 = vmatpush3.msra.mxu0 %v315_v23  ;;  %758 = vmatpush3.msra.mxu1 %v409_v28 }
  0x68   : > { %724 = vmatprep.subr.mxu0 %v1026_v0  ;;  %759 = vmatprep.subr.mxu1 %v1026_v0 }
  0x69   : > { %725 = vmatpush3.msra.mxu0 %v314_v25  ;;  %760 = vmatpush3.msra.mxu1 %v408_v31 }
  0x6a   : > { %726 = vmatprep.subr.mxu0 %v1026_v0  ;;  %761 = vmatprep.subr.mxu1 %v1026_v0 }
  0x6b   : > { %727 = vmatpush3.msra.mxu0 %v313_v27  ;;  %762 = vmatpush3.msra.mxu1 %v407_v32 }
  0x6c   : > { %728 = vmatprep.subr.mxu0 %v1026_v0  ;;  %763 = vmatprep.subr.mxu1 %v1026_v0 }
  0x6d   : > { %729 = vmatpush3.msra.mxu0 %v312_v29  ;;  %764 = vmatpush3.msra.mxu1 %v406_v33 }
  0x6e   : > { %731 = vmatmul.mubr.f32.vlgmr.msra.gmra.mxu0 %v311_v30 }
 0x12e   : > { %v401_v35 = vpop.f32.mrf.mxu0 }
 0x12f   : > { %v402_v36 = vadd.f32 %v658_v34, %v401_v35 }
 0x130   : > { %v732_v37 = vpop.f32.mrf.mxu0 }
 0x131   : > { %v405_v38 = vmax.f32 %v402_v36, 0.0 }
 0x133   : > { %766 = vmatmul.mubr.f32.vlgmr.msra.gmra.mxu1 %v405_v38 }
 0x1f3   : > { %v488_v40 = vpop.f32.mrf.mxu1 }
 0x1f4   : > { %v515_v41 = vadd.f32 %v659_v39, %v488_v40 }
 0x1f5   : > { %v767_v42 = vpop.f32.mrf.mxu1 }
 0x1f6   : > { %516 = vst [vmem:[%s306_s16] sm:$0xff] %v515_v41 }
 0x1f7   : > { %948 = shalt.err (!%p945_p5)
}
 0x1f8   : > { %s949_s1 = scalar_lea.hbm %s1244_s8, 128  ;;  %s953_s28 = scalar_lea.hbm %s1291_s5, 256 }
 0x1f9   : > { %p950_p10 = scmp.ne.s32.totalorder %s1244_s8, %s949_s1  ;;  %p954_p6 = scmp.lt.s32.totalorder %s1244_s8, %s1291_s5 }
 0x1fa   : > { %p955_p12 = scmp.lt.s32.totalorder %s953_s28, %s949_s1 }
 0x1fb   : > { %p951_p1 = pnand %p950_p10, %p1154_p7 }
 0x1fc   : > { %p956_p3 = por %p955_p12, %p954_p6 }
 0x1fd   : > { %p952_p4 = pneg %p951_p1 }
 0x1ff   : > { %p957_p8 = pnand %p956_p3, %p952_p4 }
 0x201   : > { %960 = shalt.err (!%p957_p8)
}
 0x202   : > { %778 = dma.vmem_to_hbm [thread:$0]  (%p1154_p7), %s532_s17, 128, %s1244_s8, %s518_s6  }
 0x203 PF: > { %s543_s15 = sand.u32 1, %s999_s18   ;;  %p1307_p9 = scmp.ne.s32.totalorder %s1299_s29, 0 }
 0x204   : > { %p1308_p11 = scmp.ge.s32.totalorder %s1019_s23, 2  ;;  %s544_s16 = scalar_lea.sflag [#allocation5], %s543_s15 }
 0x206   : > { %p792_p2 = pnand %p1308_p11, %p1307_p9 }
 0x208   : > { %p793_p13 = pneg %p792_p2 }
 0x20a   : > { %994 = dma.done.wait (%p793_p13), %s544_s16, 128  }
 0x20b   : > { %996 = vsyncadd (%p793_p13), %s544_s16, 4294967168  ;;  %s22_s23 = sadd.s32 1, %s1019_s23   ;;  %s1309_s18 = smov %s1003_s19 }
 0x20c   : > { %p19_p0 = scmp.ge.s32.totalorder %s22_s23, 4   ;;  %s1310_s19 = smov %s1007_s20 }
 0x20d   : > { %s1311_s20 = smov %s1163_s12  ;;  %s1312_s21 = smov %s1015_s22 }
 0x20e   : > { %s1313_s22 = smov %s1315_s25  ;;  %21 = sbr.rel (!%p19_p0) target bundleno = 9 (0x9), region = 110 }
 0x213   :  { %549 = vsyncpa [#allocation4], 1 }
 0x214   :  { %551 = vsyncpa [#allocation4 + $0x1], 1 }
 0x215   :  { %552 = vsyncpa [#allocation7], 1 }
 0x216   :  { %553 = vsyncpa [#allocation5], 1 }
 0x217   :  { %555 = vsyncpa [#allocation5 + $0x1], 1 }

</bundles_post_ra>
